<compile_context>
chip_gen: v7x
topology: tpu7x:2x2x1
jax: 0.10.0
libtpu: 0.0.40
codegen_flags: <defaults>
</compile_context>

<pallas_src>
import functools
import math

import jax
import jax.numpy as jnp
from jax import lax
from jax.experimental import pallas as pl
from jax.experimental.pallas import tpu as pltpu

BN_EPS = 1e-5


def basic_block_kernel(x_ref, bn1_ref, w1_ref, bn2_ref, w2_ref, o_ref,
                       *, seq_len, mxu_dtype):
    # x_ref: (rows, lanes) f32, rows = groups_per_block * L, lanes = Nb * C.
    # Each group of L consecutive rows is one packed set of Nb batch elements;
    # batch lives on lanes, sequence position lives on sublanes.
    x = x_ref[...]
    rows, _ = x.shape
    L = seq_len
    G = rows // L

    # (rows, 1) boundary masks: position of each row within its sequence.
    pos = lax.broadcasted_iota(jnp.int32, (G, L, 1), 1).reshape(rows, 1)
    has_left = pos >= 1            # row l-1 exists within the same sequence
    has_right = pos <= (L - 2)     # row l+1 exists within the same sequence

    def bn(h, p_ref):
        # p_ref rows: [scale, shift]  (BatchNorm folded host-side, eval mode)
        return h * p_ref[0:1, :] + p_ref[1:2, :]

    def conv3(h, w_ref):
        # 1-D conv, kernel_size=3, stride=1, padding=1, no bias.
        # Taps are sublane rolls; fused into one MXU matmul against a
        # block-diagonal (3*lanes, lanes) weight built host-side.
        h_l = jnp.where(has_left, pltpu.roll(h, shift=1, axis=0), 0.0)         # h[l-1]
        h_r = jnp.where(has_right, pltpu.roll(h, shift=rows - 1, axis=0), 0.0)  # h[l+1]
        h3 = jnp.concatenate([h_l, h, h_r], axis=-1).astype(mxu_dtype)         # (rows, 3*lanes)
        return jnp.dot(h3, w_ref[...], preferred_element_type=jnp.float32)

    out = jnp.maximum(bn(x, bn1_ref), 0.0)      # bn1 -> relu
    out = conv3(out, w1_ref)                    # conv1
    out = bn(out, bn2_ref)                      # bn2
    # dropout (eval mode) -> identity
    out = jnp.maximum(out, 0.0)                 # relu
    out = conv3(out, w2_ref)                    # conv2
    o_ref[...] = out + x_ref[...]               # residual add (re-read VMEM tile)


def basic_block_pallas(x_nlc, bn1, w1, bn2, w2, *,
                       mxu_dtype=jnp.bfloat16,
                       vmem_block_budget_bytes=4 * 1024 * 1024):
    """x_nlc: (N, L, C) f32.  bn*: (4, C) rows [gamma, beta, mean, var].
    w*: (3, Cin, Cout) conv weights (torch (Cout, Cin, K) transposed)."""
    N, L, C = x_nlc.shape
    K, Cin, Cout = w1.shape
    assert K == 3 and Cin == C and Cout == C, \
        "downsample is None, stride=1 => Cin == Cout, kernel_size == 3"
    assert L >= 2

    # ---- lane packing: put Nb batch elements' channels on the 128-wide lane axis
    Nb = 128 // C if (C <= 128 and 128 % C == 0) else 1
    Nb = math.gcd(Nb, N)
    assert N % Nb == 0
    num_groups = N // Nb
    lanes = Nb * C

    # ---- groups per grid step: biggest divisor whose tiles fit a VMEM budget.
    # At small sizes this gives grid=(1,) (best on single-TC v5e/v6e); with a big
    # batch it naturally yields a multi-step "parallel" grid for v7x's two TCs.
    def tile_bytes(g):
        return 4 * g * L * lanes * 4          # x + out tiles, double-buffered, f32

    G = 1
    for g in range(1, num_groups + 1):
        if num_groups % g == 0 and tile_bytes(g) <= vmem_block_budget_bytes:
            G = g
    grid = (num_groups // G,)
    rows = G * L
    assert (rows % 8 == 0) or grid == (1,), "block row count must be 8-aligned"

    # ---- fold BatchNorm (eval mode) into per-lane scale/shift rows
    def fold_bn(p):
        gamma, beta, mean, var = p[0], p[1], p[2], p[3]
        scale = gamma * lax.rsqrt(var + BN_EPS)
        shift = beta - mean * scale
        return jnp.tile(jnp.stack([scale, shift]), (1, Nb)).astype(jnp.float32)  # (2, lanes)

    bn1_f = fold_bn(bn1)
    bn2_f = fold_bn(bn2)

    # ---- block-diagonal conv weights: (3, C, C) -> (3*lanes, lanes)
    # row = tap*lanes + b*C + cin, col = b*C + cout ; zero off-diagonal batch blocks
    def block_diag(w):
        eye = jnp.eye(Nb, dtype=w.dtype)
        big = jnp.einsum('ab,kio->kaibo', eye, w)           # (3, Nb, C, Nb, C)
        return big.reshape(3 * lanes, lanes).astype(mxu_dtype)

    w1_f = block_diag(w1)
    w2_f = block_diag(w2)

    # ---- (N, L, C) -> (num_groups*L, Nb*C): batch packed on lanes
    x2d = (x_nlc.reshape(num_groups, Nb, L, C)
                 .transpose(0, 2, 1, 3)
                 .reshape(num_groups * L, lanes))

    kernel = functools.partial(basic_block_kernel, seq_len=L, mxu_dtype=mxu_dtype)

    out2d = pl.pallas_call(
        kernel,
        out_shape=jax.ShapeDtypeStruct((num_groups * L, lanes), jnp.float32),
        grid_spec=pltpu.PrefetchScalarGridSpec(
            num_scalar_prefetch=0,
            grid=grid,
            in_specs=[
                pl.BlockSpec((rows, lanes), lambda i: (i, 0)),           # x tile
                pl.BlockSpec((2, lanes), lambda i: (0, 0)),              # bn1 scale/shift
                pl.BlockSpec((3 * lanes, lanes), lambda i: (0, 0)),      # conv1 block-diag weight
                pl.BlockSpec((2, lanes), lambda i: (0, 0)),              # bn2 scale/shift
                pl.BlockSpec((3 * lanes, lanes), lambda i: (0, 0)),      # conv2 block-diag weight
            ],
            out_specs=pl.BlockSpec((rows, lanes), lambda i: (i, 0)),
        ),
        compiler_params=pltpu.CompilerParams(
            dimension_semantics=("parallel",)),
    )(x2d, bn1_f, w1_f, bn2_f, w2_f)

    return (out2d.reshape(num_groups, L, Nb, C)
                 .transpose(0, 2, 1, 3)
                 .reshape(N, L, C))


def basic_block_reference(x_ncl, bn1, w1, bn2, w2):
    """Pure-JAX f32 reference mirroring the PyTorch forward (eval mode), NCL layout."""
    def bn(h, p):
        g, b, m, v = p[0], p[1], p[2], p[3]
        return ((h - m[None, :, None]) * lax.rsqrt(v[None, :, None] + BN_EPS)
                * g[None, :, None] + b[None, :, None])

    def conv(h, w):
        w_t = jnp.transpose(w, (2, 1, 0))   # (K, Cin, Cout) -> (Cout, Cin, K)
        return lax.conv_general_dilated(
            h, w_t, window_strides=(1,), padding=((1, 1),),
            dimension_numbers=('NCH', 'OIH', 'NCH'))

    identity = x_ncl
    out = jnp.maximum(bn(x_ncl, bn1), 0.0)
    out = conv(out, w1)
    out = bn(out, bn2)
    out = jnp.maximum(out, 0.0)
    out = conv(out, w2)
    return out + identity


if __name__ == "__main__":
    key = jax.random.PRNGKey(0)
    kx, kw1, kw2, kg1, kb1, km1, kv1, kg2, kb2, km2, kv2 = jax.random.split(key, 11)

    N, C, L = 8, 16, 128        # batch, channels (in == out), sequence length

    # input in PyTorch NCL layout
    x_ncl = jax.random.normal(kx, (N, C, L), dtype=jnp.float32)

    # conv weights in (K=3, Cin, Cout) layout
    w1 = 0.1 * jax.random.normal(kw1, (3, C, C), dtype=jnp.float32)
    w2 = 0.1 * jax.random.normal(kw2, (3, C, C), dtype=jnp.float32)

    # batchnorm params packed as rows [gamma, beta, running_mean, running_var]
    bn1 = jnp.stack([
        1.0 + 0.1 * jax.random.normal(kg1, (C,), dtype=jnp.float32),
        0.1 * jax.random.normal(kb1, (C,), dtype=jnp.float32),
        0.1 * jax.random.normal(km1, (C,), dtype=jnp.float32),
        1.0 + 0.1 * jax.nn.softplus(jax.random.normal(kv1, (C,), dtype=jnp.float32)),
    ])
    bn2 = jnp.stack([
        1.0 + 0.1 * jax.random.normal(kg2, (C,), dtype=jnp.float32),
        0.1 * jax.random.normal(kb2, (C,), dtype=jnp.float32),
        0.1 * jax.random.normal(km2, (C,), dtype=jnp.float32),
        1.0 + 0.1 * jax.nn.softplus(jax.random.normal(kv2, (C,), dtype=jnp.float32)),
    ])

    # pure-JAX f32 reference
    ref_ncl = basic_block_reference(x_ncl, bn1, w1, bn2, w2)

    # kernel runs in NLC layout
    x_nlc = jnp.transpose(x_ncl, (0, 2, 1))

    # ---- test 1: f32 MXU path, tight tolerance (catches layout / halo bugs) ----
    out_f32 = basic_block_pallas(x_nlc, bn1, w1, bn2, w2, mxu_dtype=jnp.float32)
    out_f32 = jax.block_until_ready(out_f32)
    out_f32_ncl = jnp.transpose(out_f32, (0, 2, 1))
    err_f32 = float(jnp.max(jnp.abs(out_f32_ncl - ref_ncl)))
    assert out_f32_ncl.shape == (N, C, L)
    assert jnp.allclose(out_f32_ncl, ref_ncl, atol=2e-3, rtol=2e-3), err_f32

    # ---- test 2: bf16 MXU path (production dtype), loose tolerance ------------
    out_bf16 = basic_block_pallas(x_nlc, bn1, w1, bn2, w2, mxu_dtype=jnp.bfloat16)
    out_bf16 = jax.block_until_ready(out_bf16)
    out_bf16_ncl = jnp.transpose(out_bf16, (0, 2, 1))
    err_bf16 = float(jnp.max(jnp.abs(out_bf16_ncl - ref_ncl)))
    assert jnp.allclose(out_bf16_ncl, ref_ncl, atol=1e-1, rtol=5e-2), err_bf16

    print("KERNEL_OK")
</pallas_src>

<mosaic_0001>
module attributes {stable_mosaic.version = 11 : i64} {
  func.func @basic_block_kernel(%arg0: i32, %arg1: memref<128x128xf32, #tpu.memory_space<vmem>>, %arg2: memref<2x128xf32, #tpu.memory_space<vmem>>, %arg3: memref<384x128xf32, #tpu.memory_space<vmem>>, %arg4: memref<2x128xf32, #tpu.memory_space<vmem>>, %arg5: memref<384x128xf32, #tpu.memory_space<vmem>>, %arg6: memref<128x128xf32, #tpu.memory_space<vmem>>) attributes {dimension_semantics = [#tpu.dimension_semantics<parallel>], iteration_bounds = array<i64: 1>, scalar_prefetch = 0 : i64, scratch_operands = 0 : i64, tpu.core_type = #tpu.core_type<tc>, window_params = [{transform_indices = @transform_0, window_bounds = array<i64: 128, 128>}, {pipeline_mode = #tpu.pipeline_mode<synchronous>, transform_indices = @transform_1, window_bounds = array<i64: 2, 128>}, {pipeline_mode = #tpu.pipeline_mode<synchronous>, transform_indices = @transform_2, window_bounds = array<i64: 384, 128>}, {pipeline_mode = #tpu.pipeline_mode<synchronous>, transform_indices = @transform_3, window_bounds = array<i64: 2, 128>}, {pipeline_mode = #tpu.pipeline_mode<synchronous>, transform_indices = @transform_4, window_bounds = array<i64: 384, 128>}, {transform_indices = @transform_5, window_bounds = array<i64: 128, 128>}]} {
    %c0 = arith.constant 0 : index
    %c0_0 = arith.constant 0 : index
    %0 = vector.load %arg1[%c0, %c0_0] : memref<128x128xf32, #tpu.memory_space<vmem>>, vector<128x128xf32>
    %1 = tpu.iota {dimensions = array<i32: 1>} : vector<1x128x1xi32>
    %2 = vector.shape_cast %1 : vector<1x128x1xi32> to vector<128x1xi32>
    %c1_i32 = arith.constant 1 : i32
    %3 = vector.broadcast %c1_i32 : i32 to vector<128x1xi32>
    %4 = arith.cmpi sge, %2, %3 : vector<128x1xi32>
    %c126_i32 = arith.constant 126 : i32
    %5 = vector.broadcast %c126_i32 : i32 to vector<128x1xi32>
    %6 = arith.cmpi sle, %2, %5 : vector<128x1xi32>
    %c0_1 = arith.constant 0 : index
    %c0_2 = arith.constant 0 : index
    %7 = vector.load %arg2[%c0_1, %c0_2] : memref<2x128xf32, #tpu.memory_space<vmem>>, vector<1x128xf32>
    %8 = vector.broadcast %7 : vector<1x128xf32> to vector<128x128xf32>
    %9 = arith.mulf %0, %8 : vector<128x128xf32>
    %c1 = arith.constant 1 : index
    %c0_3 = arith.constant 0 : index
    %10 = vector.load %arg2[%c1, %c0_3] : memref<2x128xf32, #tpu.memory_space<vmem>>, vector<1x128xf32>
    %11 = vector.broadcast %10 : vector<1x128xf32> to vector<128x128xf32>
    %12 = arith.addf %9, %11 : vector<128x128xf32>
    %cst = arith.constant 0.000000e+00 : f32
    %13 = vector.broadcast %cst : f32 to vector<128x128xf32>
    %14 = arith.maximumf %12, %13 : vector<128x128xf32>
    %c1_i32_4 = arith.constant 1 : i32
    %15 = tpu.dynamic_rotate %14 by %c1_i32_4 dim 0 : vector<128x128xf32>, i32 -> vector<128x128xf32>
    %cst_5 = arith.constant 0.000000e+00 : f32
    %16 = vector.shape_cast %4 : vector<128x1xi1> to vector<128x1xi1>
    %17 = vector.broadcast %16 : vector<128x1xi1> to vector<128x128xi1>
    %18 = vector.broadcast %cst_5 : f32 to vector<128x128xf32>
    %19 = arith.select %17, %15, %18 : vector<128x128xi1>, vector<128x128xf32>
    %c127_i32 = arith.constant 127 : i32
    %20 = tpu.dynamic_rotate %14 by %c127_i32 dim 0 : vector<128x128xf32>, i32 -> vector<128x128xf32>
    %cst_6 = arith.constant 0.000000e+00 : f32
    %21 = vector.shape_cast %6 : vector<128x1xi1> to vector<128x1xi1>
    %22 = vector.broadcast %21 : vector<128x1xi1> to vector<128x128xi1>
    %23 = vector.broadcast %cst_6 : f32 to vector<128x128xf32>
    %24 = arith.select %22, %20, %23 : vector<128x128xi1>, vector<128x128xf32>
    %25 = tpu.concatenate %19, %14, %24 in 1 : vector<128x128xf32>, vector<128x128xf32>, vector<128x128xf32> -> vector<128x384xf32>
    %c0_7 = arith.constant 0 : index
    %c0_8 = arith.constant 0 : index
    %26 = vector.load %arg3[%c0_7, %c0_8] : memref<384x128xf32, #tpu.memory_space<vmem>>, vector<384x128xf32>
    %cst_9 = arith.constant dense<0.000000e+00> : vector<128x128xf32>
    %27 = tpu.matmul %25, %26, %cst_9 {dimension_numbers = #tpu.dot_dimension_numbers<[1], [0], [0], [1], [0, 0, 1, 1], [], []>} : vector<128x384xf32>, vector<384x128xf32>, vector<128x128xf32> -> vector<128x128xf32>
    %c0_10 = arith.constant 0 : index
    %c0_11 = arith.constant 0 : index
    %28 = vector.load %arg4[%c0_10, %c0_11] : memref<2x128xf32, #tpu.memory_space<vmem>>, vector<1x128xf32>
    %29 = vector.broadcast %28 : vector<1x128xf32> to vector<128x128xf32>
    %30 = arith.mulf %27, %29 : vector<128x128xf32>
    %c1_12 = arith.constant 1 : index
    %c0_13 = arith.constant 0 : index
    %31 = vector.load %arg4[%c1_12, %c0_13] : memref<2x128xf32, #tpu.memory_space<vmem>>, vector<1x128xf32>
    %32 = vector.broadcast %31 : vector<1x128xf32> to vector<128x128xf32>
    %33 = arith.addf %30, %32 : vector<128x128xf32>
    %cst_14 = arith.constant 0.000000e+00 : f32
    %34 = vector.broadcast %cst_14 : f32 to vector<128x128xf32>
    %35 = arith.maximumf %33, %34 : vector<128x128xf32>
    %c1_i32_15 = arith.constant 1 : i32
    %36 = tpu.dynamic_rotate %35 by %c1_i32_15 dim 0 : vector<128x128xf32>, i32 -> vector<128x128xf32>
    %cst_16 = arith.constant 0.000000e+00 : f32
    %37 = vector.shape_cast %4 : vector<128x1xi1> to vector<128x1xi1>
    %38 = vector.broadcast %37 : vector<128x1xi1> to vector<128x128xi1>
    %39 = vector.broadcast %cst_16 : f32 to vector<128x128xf32>
    %40 = arith.select %38, %36, %39 : vector<128x128xi1>, vector<128x128xf32>
    %c127_i32_17 = arith.constant 127 : i32
    %41 = tpu.dynamic_rotate %35 by %c127_i32_17 dim 0 : vector<128x128xf32>, i32 -> vector<128x128xf32>
    %cst_18 = arith.constant 0.000000e+00 : f32
    %42 = vector.shape_cast %6 : vector<128x1xi1> to vector<128x1xi1>
    %43 = vector.broadcast %42 : vector<128x1xi1> to vector<128x128xi1>
    %44 = vector.broadcast %cst_18 : f32 to vector<128x128xf32>
    %45 = arith.select %43, %41, %44 : vector<128x128xi1>, vector<128x128xf32>
    %46 = tpu.concatenate %40, %35, %45 in 1 : vector<128x128xf32>, vector<128x128xf32>, vector<128x128xf32> -> vector<128x384xf32>
    %c0_19 = arith.constant 0 : index
    %c0_20 = arith.constant 0 : index
    %47 = vector.load %arg5[%c0_19, %c0_20] : memref<384x128xf32, #tpu.memory_space<vmem>>, vector<384x128xf32>
    %cst_21 = arith.constant dense<0.000000e+00> : vector<128x128xf32>
    %48 = tpu.matmul %46, %47, %cst_21 {dimension_numbers = #tpu.dot_dimension_numbers<[1], [0], [0], [1], [0, 0, 1, 1], [], []>} : vector<128x384xf32>, vector<384x128xf32>, vector<128x128xf32> -> vector<128x128xf32>
    %c0_22 = arith.constant 0 : index
    %c0_23 = arith.constant 0 : index
    %49 = vector.load %arg1[%c0_22, %c0_23] : memref<128x128xf32, #tpu.memory_space<vmem>>, vector<128x128xf32>
    %50 = arith.addf %48, %49 : vector<128x128xf32>
    %c0_24 = arith.constant 0 : index
    %c0_25 = arith.constant 0 : index
    %51 = vector.load %arg6[%c0_24, %c0_25] : memref<128x128xf32, #tpu.memory_space<vmem>>, vector<128x128xf32>
    tpu.vector_store %arg6[%c0_24, %c0_25], %50 {strides = array<i32>} : memref<128x128xf32, #tpu.memory_space<vmem>>, vector<128x128xf32>,
    return
  }
  func.func @transform_0(%arg0: i32) -> (i32, i32) {
    %c0_i32 = arith.constant 0 : i32
    %c0_i32_0 = arith.constant 0 : i32
    return %arg0, %c0_i32 : i32, i32
  }
  func.func @transform_1(%arg0: i32) -> (i32, i32) {
    %c0_i32 = arith.constant 0 : i32
    %c0_i32_0 = arith.constant 0 : i32
    %c0_i32_1 = arith.constant 0 : i32
    return %c0_i32, %c0_i32_0 : i32, i32
  }
  func.func @transform_2(%arg0: i32) -> (i32, i32) {
    %c0_i32 = arith.constant 0 : i32
    %c0_i32_0 = arith.constant 0 : i32
    %c0_i32_1 = arith.constant 0 : i32
    return %c0_i32, %c0_i32_0 : i32, i32
  }
  func.func @transform_3(%arg0: i32) -> (i32, i32) {
    %c0_i32 = arith.constant 0 : i32
    %c0_i32_0 = arith.constant 0 : i32
    %c0_i32_1 = arith.constant 0 : i32
    return %c0_i32, %c0_i32_0 : i32, i32
  }
  func.func @transform_4(%arg0: i32) -> (i32, i32) {
    %c0_i32 = arith.constant 0 : i32
    %c0_i32_0 = arith.constant 0 : i32
    %c0_i32_1 = arith.constant 0 : i32
    return %c0_i32, %c0_i32_0 : i32, i32
  }
  func.func @transform_5(%arg0: i32) -> (i32, i32) {
    %c0_i32 = arith.constant 0 : i32
    %c0_i32_0 = arith.constant 0 : i32
    return %arg0, %c0_i32 : i32, i32
  }
}

</mosaic_0001>

<bundles_post_ra>
// kernel: tpu_custom_call.1
= control target key start
LH: loop header
LB: loop body
LE: loop exit
PB: predicated region body
PF: predicated region fallthrough
CT: control target
= control target key end

     0   :  { %10 = vsyncpa [#allocation3], 0  ;;  %s2373_s0 = inlined_call_operand.hbm [shape: f32[128,128], index: 0, kind: input, shape index: {}]   ;;  %s2374_s1 = inlined_call_operand.vmem [shape: f32[2,128], index: 1, kind: input, shape index: {}]   ;;  %s2375_s2 = inlined_call_operand.hbm [shape: f32[384,128], index: 2, kind: input, shape index: {}]   ;;  %s2376_s3 = inlined_call_operand.vmem [shape: f32[2,128], index: 3, kind: input, shape index: {}]   ;;  %s2377_s4 = inlined_call_operand.hbm [shape: f32[384,128], index: 4, kind: input, shape index: {}]   ;;  %s2378_s5 = inlined_call_operand.hbm [shape: f32[128,128], index: 5, kind: output, shape index: {}]  }
   0x1   :  { %11 = vsyncpa [#allocation6], 0 }
   0x2   :  { %12 = vsyncpa [#allocation4], 0  ;;  %s1799_s18 = smov [#allocation5]   ;;  %s1800_s20 = smov [#allocation2]  }
   0x3   :  { %s32_s19 = sshll.u32 %s1799_s18, 4  ;;  %s18_s21 = sshll.u32 %s1800_s20, 4  ;;  %s33_s19 = int_to_ptr.vmem [resolvable:$true] %s32_s19  ;;  %s1835_s21 = int_to_ptr.vmem [resolvable:$true] %s18_s21 }
   0x4   :  { %s1705_s24 = scalar_lea.hbm %s2375_s2, 6144 }
   0x5   :  { %p1706_p0 = scmp.ne.s32.totalorder %s2375_s2, %s1705_s24  ;;  %p1709_p1 = scmp.lt.u32.totalorder %s1705_s24, %s2375_s2 }
   0x7   :  { %p1711_p2 = pnand %p1709_p1, %p1706_p0 }
   0x9   :  { %1714 = shalt.err (!%p1711_p2)
}
   0xa   :  { %s1715_s29 = scalar_lea.vmem %s33_s19, 6144  ;;  %p1720_p4 = scmp.lt.s32.totalorder %s33_s19, %s33_s19 }
   0xb   :  { %p1716_p3 = scmp.ne.s32.totalorder %s33_s19, %s1715_s29  ;;  %p1721_p5 = scmp.lt.s32.totalorder %s1715_s29, %s1715_s29 }
   0xd   :  { %p1722_p6 = por %p1721_p5, %p1720_p4 }
   0xf   :  { %p1723_p7 = pnand %p1722_p6, %p1716_p3 }
  0x11   :  { %1726 = shalt.err (!%p1723_p7)
}
  0x12   :  { %s1801_s30 = smov 128   ;;  %s1802_s6 = smov 8  }
  0x13   :  { %38 = dma.hbm_to_vmem [thread:$0]  %s2375_s2, 6144, %s33_s19, [#allocation6], %s1801_s30, %s1801_s30, %s1802_s6  }
  0x14   :  { %s1727_s11 = scalar_lea.hbm %s2373_s0, 2048 }
  0x15   :  { %p1728_p8 = scmp.ne.s32.totalorder %s2373_s0, %s1727_s11  ;;  %p1731_p9 = scmp.lt.u32.totalorder %s1727_s11, %s2373_s0 }
  0x17   :  { %p1733_p10 = pnand %p1731_p9, %p1728_p8 }
  0x19   :  { %1736 = shalt.err (!%p1733_p10)
}
  0x1a   :  { %s1737_s16 = scalar_lea.vmem %s1835_s21, 2048  ;;  %p1742_p12 = scmp.lt.s32.totalorder %s1835_s21, %s1835_s21 }
  0x1b   :  { %p1738_p11 = scmp.ne.s32.totalorder %s1835_s21, %s1737_s16  ;;  %p1743_p13 = scmp.lt.s32.totalorder %s1737_s16, %s1737_s16 }
  0x1d   :  { %p1744_p0 = por %p1743_p13, %p1742_p12 }
  0x1f   :  { %p1745_p1 = pnand %p1744_p0, %p1738_p11 }
  0x21   :  { %1748 = shalt.err (!%p1745_p1)
}
  0x22   :  { %24 = dma.hbm_to_vmem [thread:$0]  %s2373_s0, 2048, %s1835_s21, [#allocation3], %s1801_s30, %s1801_s30, %s1802_s6  }
  0x23   :  { %s1803_s18 = smov [#allocation7]   ;;  %s1749_s23 = scalar_lea.hbm %s2377_s4, 6144 }
  0x24   :  { %s46_s19 = sshll.u32 %s1803_s18, 4  ;;  %p1750_p2 = scmp.ne.s32.totalorder %s2377_s4, %s1749_s23  ;;  %s47_s19 = int_to_ptr.vmem [resolvable:$true] %s46_s19 }
  0x25   :  { %p1753_p3 = scmp.lt.u32.totalorder %s1749_s23, %s2377_s4 }
  0x27   :  { %p1755_p4 = pnand %p1753_p3, %p1750_p2 }
  0x29   :  { %1758 = shalt.err (!%p1755_p4)
}
  0x2a   :  { %s1759_s28 = scalar_lea.vmem %s47_s19, 6144  ;;  %p1764_p6 = scmp.lt.s32.totalorder %s47_s19, %s47_s19 }
  0x2b   :  { %p1760_p5 = scmp.ne.s32.totalorder %s47_s19, %s1759_s28  ;;  %p1765_p7 = scmp.lt.s32.totalorder %s1759_s28, %s1759_s28 }
  0x2d   :  { %p1766_p8 = por %p1765_p7, %p1764_p6 }
  0x2f   :  { %p1767_p9 = pnand %p1766_p8, %p1760_p5 }
  0x31   :  { %1770 = shalt.err (!%p1767_p9)
}
  0x32   :  { %52 = dma.hbm_to_vmem [thread:$0]  %s2377_s4, 6144, %s47_s19, [#allocation6], %s1801_s30, %s1801_s30, %s1802_s6  }
  0x33   :  { %1793 = dma.done.wait [#allocation3], 2048  }
  0x34   :  { %1794 = vsyncadd [#allocation3], 4294965248 }
  0x35   :  { %1795 = dma.done.wait [#allocation6], 12288  }
  0x36   :  { %1796 = vsyncadd [#allocation6], 4294955008  ;;  %v363_v0 = vld [vmem:[#allocation5 + $0x80] sm:$0xff]  ;;  %v364_v1 = vld [vmem:[#allocation5 + $0x88] sm:$0xff]  ;;  %v78_v50 = vlaneseq }
  0x37   :  { %v347_v2 = vld [vmem:[#allocation5] sm:$0xff]  ;;  %v1555_v3 = vpack.c.bf16 %v364_v1, %v363_v0  ;;  %v348_v4 = vld [vmem:[#allocation5 + $0x8] sm:$0xff]  ;;  %v365_v9 = vld [vmem:[#allocation5 + $0x90] sm:$0xff] }
  0x38   :  { %v379_v5 = vld [vmem:[#allocation5 + $0x100] sm:$0xff]  ;;  %v380_v6 = vld [vmem:[#allocation5 + $0x108] sm:$0xff]  ;;  %v1557_v7 = vpack.c.bf16 %v348_v4, %v347_v2  ;;  %v366_v10 = vld [vmem:[#allocation5 + $0x98] sm:$0xff] }
  0x39   :  { %v1587_v8 = vpack.c.bf16 %v380_v6, %v379_v5  ;;  %v349_v11 = vld [vmem:[#allocation5 + $0x10] sm:$0xff]  ;;  %1556 = vmatprep.subr.bf16.mxu0 %v1555_v3  ;;  %v1559_v12 = vpack.c.bf16 %v366_v10, %v365_v9  ;;  %v350_v13 = vld [vmem:[#allocation5 + $0x18] sm:$0xff]  ;;  %v367_v18 = vld [vmem:[#allocation5 + $0xa0] sm:$0xff] }
  0x3a   :  { %v381_v14 = vld [vmem:[#allocation5 + $0x110] sm:$0xff]  ;;  %v382_v15 = vld [vmem:[#allocation5 + $0x118] sm:$0xff]  ;;  %1558 = vmatpush3.bf16.msra.mxu0 %v1557_v7  ;;  %v1561_v16 = vpack.c.bf16 %v350_v13, %v349_v11  ;;  %v368_v19 = vld [vmem:[#allocation5 + $0xa8] sm:$0xff]  ;;  %v1902_v7 = vshrl.u32 %v78_v50, 7 }
  0x3b   :  { %1588 = vmatprep.subr.bf16.mxu1 %v1587_v8  ;;  %v1591_v17 = vpack.c.bf16 %v382_v15, %v381_v14  ;;  %v351_v20 = vld [vmem:[#allocation5 + $0x20] sm:$0xff]  ;;  %1560 = vmatprep.subr.bf16.mxu0 %v1559_v12  ;;  %v1563_v21 = vpack.c.bf16 %v368_v19, %v367_v18  ;;  %v352_v22 = vld [vmem:[#allocation5 + $0x28] sm:$0xff]  ;;  %v369_v26 = vld [vmem:[#allocation5 + $0xb0] sm:$0xff] }
  0x3c   :  { %1590 = vmatpush3.bf16.msra.mxu1 %v1587_v8  ;;  %v383_v23 = vld [vmem:[#allocation5 + $0x120] sm:$0xff]  ;;  %v384_v24 = vld [vmem:[#allocation5 + $0x128] sm:$0xff]  ;;  %v370_v27 = vld [vmem:[#allocation5 + $0xb8] sm:$0xff]  ;;  %v1565_v30 = vpack.c.bf16 %v352_v22, %v351_v20  ;;  %vm282_vm0 = vcmp.lt.s32.totalorder %v1902_v7, 7  ;;  %vm201_vm1 = vcmp.lt.s32.totalorder %v1902_v7, 1  ;;  %vm95_vm2 = vcmp.ge.s32.totalorder %v1902_v7, 1 }
  0x3d   :  { %1592 = vmatprep.subr.bf16.mxu1 %v1591_v17  ;;  %v1595_v25 = vpack.c.bf16 %v384_v24, %v383_v23  ;;  %v385_v28 = vld [vmem:[#allocation5 + $0x130] sm:$0xff]  ;;  %v386_v29 = vld [vmem:[#allocation5 + $0x138] sm:$0xff]  ;;  %v1567_v31 = vpack.c.bf16 %v370_v27, %v369_v26  ;;  %v371_v35 = vld [vmem:[#allocation5 + $0xc0] sm:$0xff] }
  0x3e   :  { %1562 = vmatpush3.bf16.msra.mxu0 %v1561_v16  ;;  %v353_v32 = vld [vmem:[#allocation5 + $0x30] sm:$0xff]  ;;  %v354_v33 = vld [vmem:[#allocation5 + $0x38] sm:$0xff]  ;;  %v1599_v34 = vpack.c.bf16 %v386_v29, %v385_v28  ;;  %v372_v36 = vld [vmem:[#allocation5 + $0xc8] sm:$0xff] }
  0x3f   :  { %1564 = vmatprep.subr.bf16.mxu0 %v1563_v21  ;;  %v387_v37 = vld [vmem:[#allocation5 + $0x140] sm:$0xff]  ;;  %v388_v38 = vld [vmem:[#allocation5 + $0x148] sm:$0xff]  ;;  %v1569_v39 = vpack.c.bf16 %v354_v33, %v353_v32  ;;  %v1571_v40 = vpack.c.bf16 %v372_v36, %v371_v35  ;;  %v373_v44 = vld [vmem:[#allocation5 + $0xd0] sm:$0xff] }
  0x40   :  { %1594 = vmatpush3.bf16.msra.mxu1 %v1591_v17  ;;  %v355_v41 = vld [vmem:[#allocation5 + $0x40] sm:$0xff]  ;;  %v356_v42 = vld [vmem:[#allocation5 + $0x48] sm:$0xff]  ;;  %v1603_v43 = vpack.c.bf16 %v388_v38, %v387_v37  ;;  %v374_v45 = vld [vmem:[#allocation5 + $0xd8] sm:$0xff] }
  0x41   :  { %1596 = vmatprep.subr.bf16.mxu1 %v1595_v25  ;;  %v357_v46 = vld [vmem:[#allocation5 + $0x50] sm:$0xff]  ;;  %v358_v47 = vld [vmem:[#allocation5 + $0x58] sm:$0xff]  ;;  %v1573_v51 = vpack.c.bf16 %v356_v42, %v355_v41  ;;  %v375_v52 = vld [vmem:[#allocation5 + $0xe0] sm:$0xff]  ;;  %v1575_v56 = vpack.c.bf16 %v374_v45, %v373_v44 }
  0x42   :  { %1566 = vmatpush3.bf16.msra.mxu0 %v1565_v30  ;;  %v389_v48 = vld [vmem:[#allocation5 + $0x150] sm:$0xff]  ;;  %v390_v49 = vld [vmem:[#allocation5 + $0x158] sm:$0xff]  ;;  %v62_v53 = vld [vmem:[#allocation2] sm:$0xff]  ;;  %v1577_v10 = vpack.c.bf16 %v358_v47, %v357_v46 }
  0x43   :  { %1568 = vmatprep.subr.bf16.mxu0 %v1567_v31  ;;  %v1890_v54 = vld [vmem:[%s2374_s1] ss:$0 sm:$0xff]  ;;  %v1895_v55 = vld [vmem:[%s2374_s1 + $0x1] ss:$0 sm:$0xff]  ;;  %v77_v58 = vld [vmem:[#allocation2 + $0x78] sm:$0xff]  ;;  %v1607_v61 = vpack.c.bf16 %v390_v49, %v389_v48 }
  0x44   :  { %1598 = vmatpush3.bf16.msra.mxu1 %v1595_v25  ;;  %v132_v57 = vmul.f32 %v1890_v54, %v62_v53  ;;  %v63_v59 = vld [vmem:[#allocation2 + $0x8] sm:$0xff]  ;;  %v64_v60 = vld [vmem:[#allocation2 + $0x10] sm:$0xff]  ;;  %v147_v63 = vmul.f32 %v1890_v54, %v77_v58  ;;  %v65_v2 = vld [vmem:[#allocation2 + $0x18] sm:$0xff] }
  0x45   :  { %1600 = vmatprep.subr.bf16.mxu1 %v1599_v34  ;;  %v376_v62 = vld [vmem:[#allocation5 + $0xe8] sm:$0xff]  ;;  %v133_v0 = vmul.f32 %v1890_v54, %v63_v59  ;;  %v134_v1 = vmul.f32 %v1890_v54, %v64_v60  ;;  %v66_v3 = vld [vmem:[#allocation2 + $0x20] sm:$0xff]  ;;  %v135_v8 = vmul.f32 %v1890_v54, %v65_v2  ;;  %v68_v19 = vld [vmem:[#allocation2 + $0x30] sm:$0xff] }
  0x46   :  { %1570 = vmatpush3.bf16.msra.mxu0 %v1569_v39  ;;  %v391_v4 = vld [vmem:[#allocation5 + $0x160] sm:$0xff]  ;;  %v392_v5 = vld [vmem:[#allocation5 + $0x168] sm:$0xff]  ;;  %v153_v6 = vadd.f32 %v1895_v55, %v132_v57  ;;  %v168_v11 = vadd.f32 %v1895_v55, %v147_v63  ;;  %v1579_v13 = vpack.c.bf16 %v376_v62, %v375_v52  ;;  %v136_v18 = vmul.f32 %v1890_v54, %v66_v3  ;;  %v377_v21 = vld [vmem:[#allocation5 + $0xf0] sm:$0xff] }
  0x47   :  { %1572 = vmatprep.subr.bf16.mxu0 %v1571_v40  ;;  %v67_v9 = vld [vmem:[#allocation2 + $0x28] sm:$0xff]  ;;  %v154_v12 = vadd.f32 %v1895_v55, %v133_v0  ;;  %v359_v14 = vld [vmem:[#allocation5 + $0x60] sm:$0xff]  ;;  %v155_v17 = vadd.f32 %v1895_v55, %v134_v1  ;;  %v1611_v20 = vpack.c.bf16 %v392_v5, %v391_v4  ;;  %v378_v22 = vld [vmem:[#allocation5 + $0xf8] sm:$0xff]  ;;  %v156_v24 = vadd.f32 %v1895_v55, %v135_v8 }
  0x48   :  { %1602 = vmatpush3.bf16.msra.mxu1 %v1599_v34  ;;  %v360_v15 = vld [vmem:[#allocation5 + $0x68] sm:$0xff]  ;;  %v1907_v16 = vmax.f32 %v153_v6, 0.0  ;;  %v137_v25 = vmul.f32 %v1890_v54, %v67_v9  ;;  %v393_v26 = vld [vmem:[#allocation5 + $0x170] sm:$0xff]  ;;  %v394_v27 = vld [vmem:[#allocation5 + $0x178] sm:$0xff]  ;;  %v1918_v32 = vmax.f32 %v168_v11, 0.0  ;;  %v138_v34 = vmul.f32 %v1890_v54, %v68_v19 }
  0x49   :  { %1604 = vmatprep.subr.bf16.mxu1 %v1603_v43  ;;  %v1911_v23 = vmax.f32 %v154_v12, 0.0  ;;  %v1581_v29 = vpack.c.bf16 %v360_v15, %v359_v14  ;;  %v361_v30 = vld [vmem:[#allocation5 + $0x70] sm:$0xff]  ;;  %v362_v31 = vld [vmem:[#allocation5 + $0x78] sm:$0xff]  ;;  %v1583_v35 = vpack.c.bf16 %v378_v22, %v377_v21  ;;  %v1922_v36 = vmax.f32 %v155_v17, 0.0  ;;  %v71_v45 = vld [vmem:[#allocation2 + $0x48] sm:$0xff] }
  0x4a   :  { %1574 = vmatpush3.bf16.msra.mxu0 %v1573_v51  ;;  %459 = vmatprep.mubr.f32.mxu0 %v1907_v16  ;;  %v266_v28 = vrot.slane %v1907_v16, 1  ;;  %v157_v37 = vadd.f32 %v1895_v55, %v136_v18  ;;  %v69_v38 = vld [vmem:[#allocation2 + $0x38] sm:$0xff]  ;;  %v1615_v39 = vpack.c.bf16 %v394_v27, %v393_v26  ;;  %v1929_v41 = vmax.f32 %v156_v24, 0.0  ;;  %v72_v58 = vld [vmem:[#allocation2 + $0x50] sm:$0xff]  ;;  %v74_v9 = vld [vmem:[#allocation2 + $0x60] sm:$0xff] }
  0x4b   :  { %1576 = vmatprep.subr.bf16.mxu0 %v1575_v56  ;;  %v267_v33 = vrot.slane %v1911_v23, 1  ;;  %v158_v42 = vadd.f32 %v1895_v55, %v137_v25  ;;  %v1585_v44 = vpack.c.bf16 %v362_v31, %v361_v30  ;;  %v185_v46 = vrot.slane %v1907_v16, 7  ;;  %v73_v63 = vld [vmem:[#allocation2 + $0x58] sm:$0xff]  ;;  %v75_v11 = vld [vmem:[#allocation2 + $0x68] sm:$0xff]  ;;  %v76_v26 = vld [vmem:[#allocation2 + $0x70] sm:$0xff] }
  0x4c   :  { %1606 = vmatpush3.bf16.msra.mxu1 %v1603_v43  ;;  %v70_v43 = vld [vmem:[#allocation2 + $0x40] sm:$0xff]  ;;  %v200_v47 = vrot.slane %v1918_v32, 7  ;;  %v159_v48 = vadd.f32 %v1895_v55, %v138_v34  ;;  %v139_v49 = vmul.f32 %v1890_v54, %v69_v38  ;;  %v268_v50 = vrot.slane %v1922_v36, 1  ;;  %v872_v21 = vld [vmem:[#allocation7 + $0x108] sm:$0xff]  ;;  %v873_v34 = vld [vmem:[#allocation7 + $0x110] sm:$0xff] }
  0x4d   :  { %1608 = vmatprep.subr.bf16.mxu1 %v1607_v61  ;;  %v297_v40 = vsel %vm282_vm0, %v266_v28, %v267_v33  ;;  %v1938_v51 = vmax.f32 %v157_v37, 0.0  ;;  %v140_v52 = vmul.f32 %v1890_v54, %v70_v43  ;;  %v269_v53 = vrot.slane %v1929_v41, 1 }
  0x4e   :  { %1578 = vmatpush3.bf16.msra.mxu0 %v1577_v10  ;;  %1475 = vmatprep.mubr.f32.mxu1 %v297_v40  ;;  %v1942_v56 = vmax.f32 %v158_v42, 0.0  ;;  %v141_v57 = vmul.f32 %v1890_v54, %v71_v45  ;;  %v160_v59 = vadd.f32 %v1895_v55, %v139_v49  ;;  %v217_v60 = vsel %vm201_vm1, %v200_v47, %v185_v46  ;;  %v876_v49 = vld [vmem:[#allocation7 + $0x128] sm:$0xff] }
  0x4f   :  { %1580 = vmatprep.subr.bf16.mxu0 %v1579_v13  ;;  %v1952_v62 = vmax.f32 %v159_v48, 0.0  ;;  %v296_v0 = vsel %vm282_vm0, %v267_v33, %v268_v50  ;;  %v270_v1 = vrot.slane %v1938_v51, 1  ;;  %v161_v2 = vadd.f32 %v1895_v55, %v140_v52 }
  0x50   :  { %1610 = vmatpush3.bf16.msra.mxu1 %v1607_v61  ;;  %v186_v61 = vrot.slane %v1911_v23, 7  ;;  %v142_v3 = vmul.f32 %v1890_v54, %v72_v58  ;;  %v295_v4 = vsel %vm282_vm0, %v268_v50, %v269_v53  ;;  %v271_v5 = vrot.slane %v1942_v56, 1 }
  0x51   :  { %1612 = vmatprep.subr.bf16.mxu1 %v1611_v20  ;;  %v1962_v6 = vmax.f32 %v160_v59, 0.0  ;;  %v162_v8 = vadd.f32 %v1895_v55, %v141_v57  ;;  %v143_v10 = vmul.f32 %v1890_v54, %v73_v63  ;;  %v187_v13 = vrot.slane %v1922_v36, 7 }
  0x52   :  { %1582 = vmatpush3.bf16.msra.mxu0 %v1581_v29  ;;  %v216_v12 = vsel %vm201_vm1, %v185_v46, %v186_v61  ;;  %v272_v14 = vrot.slane %v1952_v62, 1  ;;  %v294_v15 = vsel %vm282_vm0, %v269_v53, %v270_v1  ;;  %v1975_v17 = vmax.f32 %v161_v2, 0.0 }
  0x53   :  { %1584 = vmatprep.subr.bf16.mxu0 %v1583_v35  ;;  %v163_v18 = vadd.f32 %v1895_v55, %v142_v3  ;;  %v144_v19 = vmul.f32 %v1890_v54, %v74_v9  ;;  %v293_v22 = vsel %vm282_vm0, %v270_v1, %v271_v5  ;;  %v1982_v24 = vmax.f32 %v162_v8, 0.0  ;;  %v874_v35 = vld [vmem:[#allocation7 + $0x118] sm:$0xff] }
  0x54   :  { %1614 = vmatpush3.bf16.msra.mxu1 %v1611_v20  ;;  %v871_v20 = vld [vmem:[#allocation7 + $0x100] sm:$0xff]  ;;  %v145_v25 = vmul.f32 %v1890_v54, %v75_v11  ;;  %v164_v27 = vadd.f32 %v1895_v55, %v143_v10  ;;  %v215_v29 = vsel %vm201_vm1, %v186_v61, %v187_v13  ;;  %v188_v30 = vrot.slane %v1929_v41, 7 }
  0x55   :  { %1616 = vmatprep.subr.bf16.mxu1 %v1615_v39  ;;  %v292_v31 = vsel %vm282_vm0, %v271_v5, %v272_v14  ;;  %v1651_v33 = vpack.c.bf16 %v872_v21, %v871_v20  ;;  %v274_v37 = vrot.slane %v1975_v17, 1  ;;  %v1993_v38 = vmax.f32 %v163_v18, 0.0 }
  0x56   :  { %1586 = vmatpush3.bf16.msra.mxu0 %v1585_v44  ;;  %v275_v42 = vrot.slane %v1982_v24, 1  ;;  %v2000_v43 = vmax.f32 %v164_v27, 0.0  ;;  %v166_v44 = vadd.f32 %v1895_v55, %v145_v25  ;;  %v1655_v45 = vpack.c.bf16 %v874_v35, %v873_v34  ;;  %v879_v34 = vld [vmem:[#allocation7 + $0x140] sm:$0xff]  ;;  %v880_v35 = vld [vmem:[#allocation7 + $0x148] sm:$0xff] }
  0x57   :  { %1652 = vmatprep.subr.bf16.mxu0 %v1651_v33  ;;  %v214_v46 = vsel %vm201_vm1, %v187_v13, %v188_v30  ;;  %v189_v48 = vrot.slane %v1938_v51, 7  ;;  %v276_v52 = vrot.slane %v1993_v38, 1  ;;  %v190_v63 = vrot.slane %v1942_v56, 7 }
  0x58   :  { %1618 = vmatpush3.bf16.msra.mxu1 %v1615_v39  ;;  %v165_v39 = vadd.f32 %v1895_v55, %v144_v19  ;;  %v277_v58 = vrot.slane %v2000_v43, 1  ;;  %v2016_v59 = vmax.f32 %v166_v44, 0.0  ;;  %v281_v10 = vrot.slane %v1918_v32, 1 }
  0x59   :  { %1213 = vmatmul.mubr.msk.f32.vlgmr.msra.gmra.mrb[0].mxu0 %vm95_vm2, %v217_v60  ;;  %v213_v61 = vsel %vm201_vm1, %v188_v30, %v189_v48  ;;  %v192_v11 = vrot.slane %v1962_v6, 7  ;;  %v2047_v13 = vadd.s32 120, %v1902_v7  ;;  %v194_v19 = vrot.slane %v1982_v24, 7  ;;  %v877_v30 = vld [vmem:[#allocation7 + $0x130] sm:$0xff] }
  0x5a   :  { %464 = vmatprep.mubr.f32.mxu0 %v1911_v23  ;;  %v273_v23 = vrot.slane %v1962_v6, 1  ;;  %v2010_v53 = vmax.f32 %v165_v39, 0.0  ;;  %1654 = vmatpush3.bf16.msra.mxu0 %v1651_v33  ;;  %v287_v2 = vsel %vm282_vm0, %v276_v52, %v277_v58  ;;  %v279_v3 = vrot.slane %v2016_v59, 1  ;;  %v882_v39 = vld [vmem:[#allocation7 + $0x158] sm:$0xff] }
  0x5b   :  { %1476 = vmatmul.mubr.f32.vlgmr.msra.gmra.mrb[0].mxu1 %v296_v0  ;;  %1656 = vmatprep.subr.bf16.mxu0 %v1655_v45  ;;  %vm126_vm3 = vcmp.le.s32.totalorder %v2047_v13, 126  ;;  %v298_v18 = vsel %vm282_vm0, %v281_v10, %v266_v28  ;;  %v195_v20 = vrot.slane %v1993_v38, 7 }
  0x5c   :  { %1478 = vmatprep.mubr.f32.mxu1 %v295_v4  ;;  %v291_v40 = vsel %vm282_vm0, %v272_v14, %v273_v23  ;;  %v290_v50 = vsel %vm282_vm0, %v273_v23, %v274_v37  ;;  %v278_v0 = vrot.slane %v2010_v53, 1  ;;  %v191_v4 = vrot.slane %v1952_v62, 7 }
  0x5d   :  { %465 = vmatmul.mubr.f32.gmra.mrb[2].mxu0 %v216_v12  ;;  %v207_v28 = vsel %vm201_vm1, %v194_v19, %v195_v20 }
  0x5e   :  { %469 = vmatprep.mubr.f32.mxu0 %v1922_v36  ;;  %v146_v36 = vmul.f32 %v1890_v54, %v76_v26  ;;  %v875_v54 = vld [vmem:[#allocation7 + $0x120] sm:$0xff]  ;;  %1658 = vmatpush3.bf16.msra.mxu0 %v1655_v45  ;;  %v286_v5 = vsel %vm282_vm0, %v277_v58, %v278_v0  ;;  %v285_v9 = vsel %vm282_vm0, %v278_v0, %v279_v3  ;;  %v842_v58 = vld [vmem:[#allocation7 + $0x18] sm:$0xff]  ;;  %v844_v0 = vld [vmem:[#allocation7 + $0x28] sm:$0xff] }
  0x5f   :  { %1479 = vmatmul.mubr.f32.gmra.mrb[2].mxu1 %v294_v15  ;;  %v1659_v60 = vpack.c.bf16 %v876_v49, %v875_v54  ;;  %v193_v15 = vrot.slane %v1975_v17, 7  ;;  %v855_v45 = vld [vmem:[#allocation7 + $0x80] sm:$0xff]  ;;  %v840_v49 = vld [vmem:[#allocation7 + $0x8] sm:$0xff] }
  0x60   :  { %1481 = vmatprep.mubr.f32.mxu1 %v293_v22  ;;  %v167_v57 = vadd.f32 %v1895_v55, %v146_v36  ;;  %v288_v55 = vsel %vm282_vm0, %v275_v42, %v276_v52  ;;  %v197_v22 = vrot.slane %v2010_v53, 7  ;;  %v839_v54 = vld [vmem:[#allocation7] sm:$0xff]  ;;  %v857_v52 = vld [vmem:[#allocation7 + $0x90] sm:$0xff] }
  0x61   :  { %470 = vmatmul.mubr.f32.gmra.mrb[4].mxu0 %v215_v29  ;;  %1660 = vmatprep.subr.bf16.mxu0 %v1659_v60  ;;  %v208_v16 = vsel %vm201_vm1, %v193_v15, %v194_v19  ;;  %v850_v19 = vld [vmem:[#allocation7 + $0x58] sm:$0xff] }
  0x62   :  { %474 = vmatprep.mubr.f32.mxu0 %v1929_v41  ;;  %v289_v41 = vsel %vm282_vm0, %v274_v37, %v275_v42  ;;  %v2025_v1 = vmax.f32 %v167_v57, 0.0  ;;  %1662 = vmatpush3.bf16.msra.mxu0 %v1659_v60  ;;  %v1667_v37 = vpack.c.bf16 %v880_v35, %v879_v34  ;;  %v859_v60 = vld [vmem:[#allocation7 + $0xa0] sm:$0xff] }
  0x63   :  { %1482 = vmatmul.mubr.f32.gmra.mrb[4].mxu1 %v292_v31  ;;  %v878_v31 = vld [vmem:[#allocation7 + $0x138] sm:$0xff] }
  0x64   :  { %1484 = vmatprep.mubr.f32.mxu1 %v291_v40  ;;  %v280_v8 = vrot.slane %v2025_v1, 1  ;;  %v199_v26 = vrot.slane %v2025_v1, 7  ;;  %v1663_v33 = vpack.c.bf16 %v878_v31, %v877_v30  ;;  %v884_v40 = vld [vmem:[#allocation7 + $0x168] sm:$0xff] }
  0x65   :  { %475 = vmatmul.mubr.f32.gmra.mrb[6].mxu0 %v214_v46  ;;  %v856_v46 = vld [vmem:[#allocation7 + $0x88] sm:$0xff] }
  0x66   :  { %479 = vmatprep.mubr.f32.mxu0 %v1938_v51  ;;  %v212_v51 = vsel %vm201_vm1, %v189_v48, %v190_v63  ;;  %v284_v12 = vsel %vm282_vm0, %v279_v3, %v280_v8  ;;  %v283_v14 = vsel %vm282_vm0, %v280_v8, %v281_v10  ;;  %v202_v29 = vsel %vm201_vm1, %v199_v26, %v200_v47  ;;  %v885_v47 = vld [vmem:[#allocation7 + $0x170] sm:$0xff]  ;;  %v862_v3 = vld [vmem:[#allocation7 + $0xb8] sm:$0xff]  ;;  %v864_v10 = vld [vmem:[#allocation7 + $0xc8] sm:$0xff] }
  0x67   :  { %1485 = vmatmul.mubr.f32.gmra.mrb[6].mxu1 %v290_v50  ;;  %1664 = vmatprep.subr.bf16.mxu0 %v1663_v33  ;;  %v1619_v48 = vpack.c.bf16 %v856_v46, %v855_v45  ;;  %v1621_v50 = vpack.c.bf16 %v840_v49, %v839_v54 }
  0x68   :  { %1487 = vmatprep.mubr.f32.mxu1 %v289_v41  ;;  %1666 = vmatpush3.bf16.msra.mxu0 %v1663_v33  ;;  %v841_v41 = vld [vmem:[#allocation7 + $0x10] sm:$0xff] }
  0x69   :  { %480 = vmatmul.mubr.f32.gmra.mrb[8].mxu0 %v213_v61  ;;  %1668 = vmatprep.subr.bf16.mxu0 %v1667_v37  ;;  %v860_v61 = vld [vmem:[#allocation7 + $0xa8] sm:$0xff] }
  0x6a   :  { %484 = vmatprep.mubr.f32.mxu0 %v1942_v56  ;;  %v211_v56 = vsel %vm201_vm1, %v190_v63, %v191_v4  ;;  %1620 = vmatprep.subr.bf16.mxu1 %v1619_v48  ;;  %v1627_v63 = vpack.c.bf16 %v860_v61, %v859_v60 }
  0x6b   :  { %1488 = vmatmul.mubr.f32.gmra.mrb[8].mxu1 %v288_v55  ;;  %v843_v55 = vld [vmem:[#allocation7 + $0x20] sm:$0xff] }
  0x6c   :  { %1490 = vmatprep.mubr.f32.mxu1 %v287_v2  ;;  %1670 = vmatpush3.bf16.msra.mxu0 %v1667_v37  ;;  %v861_v2 = vld [vmem:[#allocation7 + $0xb0] sm:$0xff] }
  0x6d   :  { %485 = vmatmul.mubr.f32.gmra.mrb[10].mxu0 %v212_v51  ;;  %1622 = vmatpush3.bf16.msra.mxu1 %v1621_v50  ;;  %v1631_v51 = vpack.c.bf16 %v862_v3, %v861_v2 }
  0x6e   :  { %489 = vmatprep.mubr.f32.mxu0 %v1952_v62  ;;  %v210_v62 = vsel %vm201_vm1, %v191_v4, %v192_v11  ;;  %v845_v4 = vld [vmem:[#allocation7 + $0x30] sm:$0xff] }
  0x6f   :  { %1491 = vmatmul.mubr.f32.gmra.mrb[10].mxu1 %v286_v5  ;;  %v846_v5 = vld [vmem:[#allocation7 + $0x38] sm:$0xff] }
  0x70   :  { %1493 = vmatprep.mubr.f32.mxu1 %v285_v9  ;;  %v1633_v8 = vpack.c.bf16 %v846_v5, %v845_v4  ;;  %v863_v9 = vld [vmem:[#allocation7 + $0xc0] sm:$0xff] }
  0x71   :  { %490 = vmatmul.mubr.f32.gmra.mrb[12].mxu0 %v211_v56  ;;  %v1635_v56 = vpack.c.bf16 %v864_v10, %v863_v9 }
  0x72   :  { %494 = vmatprep.mubr.f32.mxu0 %v1962_v6  ;;  %v209_v6 = vsel %vm201_vm1, %v192_v11, %v193_v15  ;;  %v847_v11 = vld [vmem:[#allocation7 + $0x40] sm:$0xff]  ;;  %v866_v15 = vld [vmem:[#allocation7 + $0xd8] sm:$0xff] }
  0x73   :  { %1494 = vmatmul.mubr.f32.gmra.mrb[12].mxu1 %v284_v12  ;;  %v848_v12 = vld [vmem:[#allocation7 + $0x48] sm:$0xff] }
  0x74   :  { %1496 = vmatprep.mubr.f32.mxu1 %v283_v14  ;;  %v1637_v14 = vpack.c.bf16 %v848_v12, %v847_v11 }
  0x75   :  { %495 = vmatmul.mubr.f32.gmra.mrb[14].mxu0 %v210_v62  ;;  %v865_v62 = vld [vmem:[#allocation7 + $0xd0] sm:$0xff] }
  0x76   :  { %499 = vmatprep.mubr.f32.mxu0 %v1975_v17  ;;  %v196_v17 = vrot.slane %v2000_v43, 7 }
  0x77   :  { %1497 = vmatmul.mubr.msk.f32.gmra.mrb[14].mxu1 %vm126_vm3, %v298_v18  ;;  %v1639_v18 = vpack.c.bf16 %v866_v15, %v865_v62 }
  0x78   :  { %v206_v21 = vsel %vm201_vm1, %v195_v20, %v196_v17  ;;  %v205_v23 = vsel %vm201_vm1, %v196_v17, %v197_v22  ;;  %v867_v20 = vld [vmem:[#allocation7 + $0xe0] sm:$0xff] }
  0x79   :  { %500 = vmatmul.mubr.f32.gmra.mrb[16].mxu0 %v209_v6  ;;  %v849_v6 = vld [vmem:[#allocation7 + $0x50] sm:$0xff] }
  0x7a   :  { %504 = vmatprep.mubr.f32.mxu0 %v1982_v24  ;;  %v198_v24 = vrot.slane %v2016_v59, 7 }
  0x7c   :  { %v204_v25 = vsel %vm201_vm1, %v197_v22, %v198_v24  ;;  %v203_v27 = vsel %vm201_vm1, %v198_v24, %v199_v26  ;;  %v852_v22 = vld [vmem:[#allocation7 + $0x68] sm:$0xff]  ;;  %v869_v24 = vld [vmem:[#allocation7 + $0xf0] sm:$0xff] }
  0x7d   :  { %505 = vmatmul.mubr.f32.gmra.mrb[18].mxu0 %v208_v16  ;;  %v1641_v16 = vpack.c.bf16 %v850_v19, %v849_v6 }
  0x7e   :  { %509 = vmatprep.mubr.f32.mxu0 %v1993_v38  ;;  %v881_v38 = vld [vmem:[#allocation7 + $0x150] sm:$0xff] }
  0x7f   :  { %v1671_v36 = vpack.c.bf16 %v882_v39, %v881_v38  ;;  %v2097_v38 = vld [vmem:[%s2376_s3] ss:$0 sm:$0xff] }
  0x81   :  { %510 = vmatmul.mubr.f32.gmra.mrb[20].mxu0 %v207_v28  ;;  %1672 = vmatprep.subr.bf16.mxu0 %v1671_v36  ;;  %v868_v28 = vld [vmem:[#allocation7 + $0xe8] sm:$0xff] }
  0x82   :  { %514 = vmatprep.mubr.f32.mxu0 %v2000_v43  ;;  %1674 = vmatpush3.bf16.msra.mxu0 %v1671_v36  ;;  %v886_v43 = vld [vmem:[#allocation7 + $0x178] sm:$0xff]  ;;  %v1643_v17 = vpack.c.bf16 %v868_v28, %v867_v20 }
  0x83   :  { %v1679_v44 = vpack.c.bf16 %v886_v43, %v885_v47 }
  0x85   :  { %515 = vmatmul.mubr.f32.gmra.mrb[22].mxu0 %v206_v21  ;;  %v851_v21 = vld [vmem:[#allocation7 + $0x60] sm:$0xff] }
  0x86   :  { %519 = vmatprep.mubr.f32.mxu0 %v2010_v53  ;;  %v858_v53 = vld [vmem:[#allocation7 + $0x98] sm:$0xff] }
  0x87   :  { %v1623_v57 = vpack.c.bf16 %v858_v53, %v857_v52 }
  0x89   :  { %520 = vmatmul.mubr.f32.gmra.mrb[24].mxu0 %v205_v23  ;;  %1624 = vmatprep.subr.bf16.mxu1 %v1623_v57  ;;  %v1645_v23 = vpack.c.bf16 %v852_v22, %v851_v21 }
  0x8a   :  { %524 = vmatprep.mubr.f32.mxu0 %v2016_v59  ;;  %v1625_v59 = vpack.c.bf16 %v842_v58, %v841_v41 }
  0x8c   :  { %1626 = vmatpush3.bf16.msra.mxu1 %v1625_v59 }
  0x8d   :  { %525 = vmatmul.mubr.f32.gmra.mrb[26].mxu0 %v204_v25  ;;  %1628 = vmatprep.subr.bf16.mxu1 %v1627_v63  ;;  %v870_v25 = vld [vmem:[#allocation7 + $0xf8] sm:$0xff] }
  0x8e   :  { %529 = vmatprep.mubr.f32.mxu0 %v2025_v1  ;;  %v1629_v1 = vpack.c.bf16 %v844_v0, %v843_v55  ;;  %v1647_v26 = vpack.c.bf16 %v870_v25, %v869_v24 }
  0x90   :  { %1630 = vmatpush3.bf16.msra.mxu1 %v1629_v1 }
  0x91   :  { %530 = vmatmul.mubr.f32.gmra.mrb[28].mxu0 %v203_v27  ;;  %1632 = vmatprep.subr.bf16.mxu1 %v1631_v51  ;;  %v853_v27 = vld [vmem:[#allocation7 + $0x70] sm:$0xff] }
  0x92   :  { %534 = vmatprep.mubr.f32.mxu0 %v1918_v32  ;;  %v883_v32 = vld [vmem:[#allocation7 + $0x160] sm:$0xff] }
  0x93   :  { %v1675_v42 = vpack.c.bf16 %v884_v40, %v883_v32  ;;  %v2102_v40 = vld [vmem:[%s2376_s3 + $0x1] ss:$0 sm:$0xff]  ;;  %s1804_s3 = smov [#allocation8]  }
  0x94   :  { %1634 = vmatpush3.bf16.msra.mxu1 %v1633_v8  ;;  %s1198_s12 = sshll.u32 %s1804_s3, 4  ;;  %s1199_s12 = int_to_ptr.vmem [resolvable:$true] %s1198_s12 }
  0x95   :  { %535 = vmatmul.mubr.f32.gmra.mrb[30].mxu0 %v202_v29  ;;  %1676 = vmatprep.subr.bf16.mxu0 %v1675_v42  ;;  %v854_v29 = vld [vmem:[#allocation7 + $0x78] sm:$0xff]  ;;  %s1771_s13 = scalar_lea.vmem %s1199_s12, 2048  ;;  %p1776_p11 = scmp.lt.s32.totalorder %s1199_s12, %s1199_s12 }
  0x96   :  { %1678 = vmatpush3.bf16.msra.mxu0 %v1675_v42  ;;  %1636 = vmatprep.subr.bf16.mxu1 %v1635_v56  ;;  %v1649_v30 = vpack.c.bf16 %v854_v29, %v853_v27  ;;  %p1772_p10 = scmp.ne.s32.totalorder %s1199_s12, %s1771_s13  ;;  %p1777_p12 = scmp.lt.s32.totalorder %s1771_s13, %s1771_s13 }
  0x97   :  { %1680 = vmatprep.subr.bf16.mxu0 %v1679_v44 }
  0x98   :  { %1638 = vmatpush3.bf16.msra.mxu1 %v1637_v14  ;;  %p1778_p13 = por %p1777_p12, %p1776_p11 }
  0x99   :  { %1640 = vmatprep.subr.bf16.mxu1 %v1639_v18 }
  0x9a   :  { %1682 = vmatpush3.bf16.msra.mxu0 %v1679_v44  ;;  %p1779_p0 = pnand %p1778_p13, %p1772_p10 }
  0x9c   :  { %1642 = vmatpush3.bf16.msra.mxu1 %v1641_v16 }
  0x9d   :  { %1644 = vmatprep.subr.bf16.mxu1 %v1643_v17 }
  0xa0   :  { %1646 = vmatpush3.bf16.msra.mxu1 %v1645_v23 }
  0xa1   :  { %1648 = vmatprep.subr.bf16.mxu1 %v1647_v26 }
  0xa4   :  { %1650 = vmatpush3.bf16.msra.mxu1 %v1649_v30 }
 0x12c   :  { %v1251_v31 = vpop.f32.mrb[0].mxu0 }
 0x12d   :  { %v1252_v33 = vpop.f32.mrb[1].mxu0 }
 0x12e   :  { %v1477_v34 = vpop.f32.mrb[0].mxu1  ;;  %v1253_v35 = vadd.f32 %v1252_v33, %v1251_v31 }
 0x12f   :  { %v606_v37 = vpop.f32.mrb[1].mxu1 }
 0x130   :  { %v607_v39 = vadd.f32 %v1253_v35, %v606_v37  ;;  %v1254_v36 = vpop.f32.mrb[2].mxu0 }
 0x131   :  { %v1255_v32 = vpop.f32.mrb[3].mxu0 }
 0x132   :  { %v1480_v42 = vpop.f32.mrb[2].mxu1  ;;  %v690_v47 = vmul.f32 %v2097_v38, %v607_v39  ;;  %v1256_v43 = vadd.f32 %v1255_v32, %v1254_v36 }
 0x133   :  { %v616_v44 = vpop.f32.mrb[3].mxu1 }
 0x134   :  { %v612_v45 = vadd.f32 %v1477_v34, %v1256_v43  ;;  %v1257_v46 = vpop.f32.mrb[4].mxu0  ;;  %v711_v48 = vadd.f32 %v2102_v40, %v690_v47 }
 0x135   :  { %v1258_v54 = vpop.f32.mrb[5].mxu0 }
 0x136   :  { %v1483_v49 = vpop.f32.mrb[4].mxu1  ;;  %v691_v50 = vmul.f32 %v2097_v38, %v612_v45  ;;  %v1259_v52 = vadd.f32 %v1258_v54, %v1257_v46  ;;  %v2107_v53 = vmax.f32 %v711_v48, 0.0 }
 0x137   :  { %v626_v57 = vpop.f32.mrb[5].mxu1 }
 0x138   :  { %v712_v41 = vadd.f32 %v2102_v40, %v691_v50  ;;  %v617_v58 = vadd.f32 %v1259_v52, %v616_v44  ;;  %v1260_v59 = vpop.f32.mrb[6].mxu0  ;;  %951 = vmatprep.mubr.f32.mxu1 %v2107_v53  ;;  %v791_v2 = vrot.slane %v2107_v53, 1  ;;  %v743_v9 = vrot.slane %v2107_v53, 7 }
 0x139   :  { %v1261_v60 = vpop.f32.mrb[7].mxu0 }
 0x13a   :  { %v2111_v61 = vpop.f32.mrb[6].mxu1  ;;  %v2113_v63 = vmax.f32 %v712_v41, 0.0  ;;  %v692_v55 = vmul.f32 %v2097_v38, %v617_v58  ;;  %v1262_v0 = vadd.f32 %v1261_v60, %v1260_v59 }
 0x13b   :  { %v636_v1 = vpop.f32.mrb[7].mxu1 }
 0x13c   :  { %v713_v3 = vadd.f32 %v2102_v40, %v692_v55  ;;  %v622_v51 = vadd.f32 %v1480_v42, %v1262_v0  ;;  %v1263_v4 = vpop.f32.mrb[8].mxu0  ;;  %v792_v5 = vrot.slane %v2113_v63, 1  ;;  %v744_v8 = vrot.slane %v2113_v63, 7 }
 0x13d   :  { %v1264_v10 = vpop.f32.mrb[9].mxu0 }
 0x13e   :  { %v2121_v56 = vpop.f32.mrb[8].mxu1  ;;  %v2123_v11 = vmax.f32 %v713_v3, 0.0  ;;  %v693_v12 = vmul.f32 %v2097_v38, %v622_v51  ;;  %v1265_v14 = vadd.f32 %v1264_v10, %v1263_v4  ;;  %v821_v62 = vsel %vm282_vm0, %v791_v2, %v792_v5 }
 0x13f   :  { %v646_v15 = vpop.f32.mrb[9].mxu1  ;;  %1531 = vmatprep.mubr.f32.mxu0 %v821_v62  ;;  %v2134_v18 = vsel %vm201_vm1, %v743_v9, %v744_v8 }
 0x140   :  { %v793_v6 = vrot.slane %v2123_v11, 1  ;;  %v714_v19 = vadd.f32 %v2102_v40, %v693_v12  ;;  %v627_v16 = vadd.f32 %v1265_v14, %v626_v57  ;;  %v1266_v20 = vpop.f32.mrb[10].mxu0  ;;  %v745_v28 = vrot.slane %v2123_v11, 7 }
 0x141   :  { %v1267_v17 = vpop.f32.mrb[11].mxu0 }
 0x142   :  { %v2139_v21 = vpop.f32.mrb[10].mxu1  ;;  %v2141_v22 = vmax.f32 %v714_v19, 0.0  ;;  %v694_v23 = vmul.f32 %v2097_v38, %v627_v16  ;;  %v1268_v24 = vadd.f32 %v1267_v17, %v1266_v20  ;;  %v820_v25 = vsel %vm282_vm0, %v792_v5, %v793_v6 }
 0x143   :  { %v2146_v26 = vpop.f32.mrb[11].mxu1  ;;  %1532 = vmatmul.mubr.f32.vlgmr.msra.gmra.mrb[32].mxu0 %v820_v25  ;;  %v2150_v27 = vsel %vm201_vm1, %v744_v8, %v745_v28 }
 0x144   :  { %v715_v29 = vadd.f32 %v2102_v40, %v694_v23  ;;  %v632_v30 = vadd.f32 %v1483_v49, %v1268_v24  ;;  %v1269_v31 = vpop.f32.mrb[12].mxu0  ;;  %v794_v33 = vrot.slane %v2141_v22, 1  ;;  %v746_v34 = vrot.slane %v2141_v22, 7 }
 0x145   :  { %v1270_v35 = vpop.f32.mrb[13].mxu0 }
 0x146   :  { %v2155_v37 = vpop.f32.mrb[12].mxu1  ;;  %v2157_v39 = vmax.f32 %v715_v29, 0.0  ;;  %v695_v36 = vmul.f32 %v2097_v38, %v632_v30  ;;  %v1271_v32 = vadd.f32 %v1270_v35, %v1269_v31  ;;  %v819_v42 = vsel %vm282_vm0, %v793_v6, %v794_v33 }
 0x147   :  { %v2162_v47 = vpop.f32.mrb[13].mxu1  ;;  %1534 = vmatprep.mubr.f32.mxu0 %v819_v42  ;;  %v2166_v43 = vsel %vm201_vm1, %v745_v28, %v746_v34 }
 0x148   :  { %v716_v44 = vadd.f32 %v2102_v40, %v695_v36  ;;  %v637_v45 = vadd.f32 %v1271_v32, %v636_v1  ;;  %v1272_v46 = vpop.f32.mrb[14].mxu0  ;;  %v795_v48 = vrot.slane %v2157_v39, 1  ;;  %v747_v54 = vrot.slane %v2157_v39, 7 }
 0x149   :  { %v1273_v49 = vpop.f32.mrb[15].mxu0 }
 0x14a   :  { %v2171_v50 = vpop.f32.mrb[14].mxu1  ;;  %v2173_v52 = vmax.f32 %v716_v44, 0.0  ;;  %v696_v57 = vmul.f32 %v2097_v38, %v637_v45  ;;  %v1274_v41 = vadd.f32 %v1273_v49, %v1272_v46  ;;  %v818_v58 = vsel %vm282_vm0, %v794_v33, %v795_v48 }
 0x14b   :  { %v2178_v59 = vpop.f32.mrb[15].mxu1  ;;  %1535 = vmatmul.mubr.f32.gmra.mrb[34].mxu0 %v818_v58  ;;  %v2182_v60 = vsel %vm201_vm1, %v746_v34, %v747_v54 }
 0x14c   :  { %v717_v55 = vadd.f32 %v2102_v40, %v696_v57  ;;  %v642_v0 = vadd.f32 %v2111_v61, %v1274_v41  ;;  %v1275_v1 = vpop.f32.mrb[16].mxu0  ;;  %v796_v3 = vrot.slane %v2173_v52, 1  ;;  %v748_v51 = vrot.slane %v2173_v52, 7 }
 0x14d   :  { %v1276_v4 = vpop.f32.mrb[17].mxu0 }
 0x14e   :  { %v2188_v5 = vmax.f32 %v717_v55, 0.0  ;;  %v697_v8 = vmul.f32 %v2097_v38, %v642_v0  ;;  %v1277_v10 = vadd.f32 %v1276_v4, %v1275_v1  ;;  %v817_v12 = vsel %vm282_vm0, %v795_v48, %v796_v3 }
 0x14f   :  { %1537 = vmatprep.mubr.f32.mxu0 %v817_v12  ;;  %v2195_v14 = vsel %vm201_vm1, %v747_v54, %v748_v51 }
 0x150   :  { %v718_v61 = vadd.f32 %v2102_v40, %v697_v8  ;;  %v647_v62 = vadd.f32 %v1277_v10, %v646_v15  ;;  %v1278_v6 = vpop.f32.mrb[18].mxu0  ;;  %v797_v19 = vrot.slane %v2188_v5, 1  ;;  %v749_v16 = vrot.slane %v2188_v5, 7 }
 0x151   :  { %v1279_v20 = vpop.f32.mrb[19].mxu0 }
 0x152   :  { %v2200_v28 = vmax.f32 %v718_v61, 0.0  ;;  %v698_v17 = vmul.f32 %v2097_v38, %v647_v62  ;;  %v1280_v23 = vadd.f32 %v1279_v20, %v1278_v6  ;;  %v816_v24 = vsel %vm282_vm0, %v796_v3, %v797_v19 }
 0x153   :  { %1538 = vmatmul.mubr.f32.gmra.mrb[36].mxu0 %v816_v24  ;;  %v2207_v25 = vsel %vm201_vm1, %v748_v51, %v749_v16 }
 0x154   :  { %v719_v15 = vadd.f32 %v2102_v40, %v698_v17  ;;  %v652_v29 = vadd.f32 %v2121_v56, %v1280_v23  ;;  %v1281_v30 = vpop.f32.mrb[20].mxu0  ;;  %v798_v31 = vrot.slane %v2200_v28, 1  ;;  %v750_v33 = vrot.slane %v2200_v28, 7 }
 0x155   :  { %v1282_v34 = vpop.f32.mrb[21].mxu0 }
 0x156   :  { %v2213_v35 = vmax.f32 %v719_v15, 0.0  ;;  %v699_v36 = vmul.f32 %v2097_v38, %v652_v29  ;;  %v1283_v32 = vadd.f32 %v1282_v34, %v1281_v30  ;;  %v815_v42 = vsel %vm282_vm0, %v797_v19, %v798_v31 }
 0x157   :  { %1540 = vmatprep.mubr.f32.mxu0 %v815_v42  ;;  %v2220_v44 = vsel %vm201_vm1, %v749_v16, %v750_v33 }
 0x158   :  { %v720_v56 = vadd.f32 %v2102_v40, %v699_v36  ;;  %v657_v45 = vadd.f32 %v1283_v32, %v2146_v26  ;;  %v1284_v46 = vpop.f32.mrb[22].mxu0  ;;  %v799_v48 = vrot.slane %v2213_v35, 1  ;;  %v751_v54 = vrot.slane %v2213_v35, 7 }
 0x159   :  { %v1285_v49 = vpop.f32.mrb[23].mxu0 }
 0x15a   :  { %v2226_v57 = vmax.f32 %v720_v56, 0.0  ;;  %v700_v41 = vmul.f32 %v2097_v38, %v657_v45  ;;  %v1286_v58 = vadd.f32 %v1285_v49, %v1284_v46  ;;  %v814_v55 = vsel %vm282_vm0, %v798_v31, %v799_v48 }
 0x15b   :  { %1541 = vmatmul.mubr.f32.gmra.mrb[38].mxu0 %v814_v55  ;;  %v2233_v0 = vsel %vm201_vm1, %v750_v33, %v751_v54 }
 0x15c   :  { %v721_v26 = vadd.f32 %v2102_v40, %v700_v41  ;;  %v662_v1 = vadd.f32 %v2139_v21, %v1286_v58  ;;  %v1287_v3 = vpop.f32.mrb[24].mxu0  ;;  %v800_v51 = vrot.slane %v2226_v57, 1  ;;  %v752_v4 = vrot.slane %v2226_v57, 7 }
 0x15d   :  { %v1288_v8 = vpop.f32.mrb[25].mxu0 }
 0x15e   :  { %v2239_v10 = vmax.f32 %v721_v26, 0.0  ;;  %v701_v12 = vmul.f32 %v2097_v38, %v662_v1  ;;  %v1289_v61 = vadd.f32 %v1288_v8, %v1287_v3  ;;  %v813_v62 = vsel %vm282_vm0, %v799_v48, %v800_v51 }
 0x15f   :  { %1543 = vmatprep.mubr.f32.mxu0 %v813_v62  ;;  %v2246_v6 = vsel %vm201_vm1, %v751_v54, %v752_v4 }
 0x160   :  { %v722_v21 = vadd.f32 %v2102_v40, %v701_v12  ;;  %v667_v19 = vadd.f32 %v1289_v61, %v2162_v47  ;;  %v1290_v16 = vpop.f32.mrb[26].mxu0  ;;  %v801_v20 = vrot.slane %v2239_v10, 1  ;;  %v753_v17 = vrot.slane %v2239_v10, 7 }
 0x161   :  { %v1291_v23 = vpop.f32.mrb[27].mxu0 }
 0x162   :  { %v2252_v24 = vmax.f32 %v722_v21, 0.0  ;;  %v702_v15 = vmul.f32 %v2097_v38, %v667_v19  ;;  %v1292_v29 = vadd.f32 %v1291_v23, %v1290_v16  ;;  %v812_v30 = vsel %vm282_vm0, %v800_v51, %v801_v20 }
 0x163   :  { %1544 = vmatmul.mubr.f32.gmra.mrb[40].mxu0 %v812_v30  ;;  %v2259_v31 = vsel %vm201_vm1, %v752_v4, %v753_v17 }
 0x164   :  { %v723_v47 = vadd.f32 %v2102_v40, %v702_v15  ;;  %v672_v33 = vadd.f32 %v2155_v37, %v1292_v29  ;;  %v1293_v34 = vpop.f32.mrb[28].mxu0  ;;  %v802_v36 = vrot.slane %v2252_v24, 1  ;;  %v754_v32 = vrot.slane %v2252_v24, 7 }
 0x165   :  { %v1294_v42 = vpop.f32.mrb[29].mxu0 }
 0x166   :  { %v2265_v56 = vmax.f32 %v723_v47, 0.0  ;;  %v703_v45 = vmul.f32 %v2097_v38, %v672_v33  ;;  %v1295_v46 = vadd.f32 %v1294_v42, %v1293_v34  ;;  %v811_v48 = vsel %vm282_vm0, %v801_v20, %v802_v36 }
 0x167   :  { %1546 = vmatprep.mubr.f32.mxu0 %v811_v48  ;;  %v763_v54 = vsel %vm201_vm1, %v753_v17, %v754_v32  ;;  %v1691_v48 = vld [vmem:[#allocation2 + $0x10] sm:$0xff] }
 0x168   :  { %v724_v37 = vadd.f32 %v2102_v40, %v703_v45  ;;  %v677_v49 = vadd.f32 %v1295_v46, %v2178_v59  ;;  %v1296_v41 = vpop.f32.mrb[30].mxu0  ;;  %v803_v58 = vrot.slane %v2265_v56, 1  ;;  %v755_v55 = vrot.slane %v2265_v56, 7 }
 0x169   :  { %v1297_v26 = vpop.f32.mrb[31].mxu0 }
 0x16a   :  { %v740_v1 = vmax.f32 %v724_v37, 0.0  ;;  %v704_v3 = vmul.f32 %v2097_v38, %v677_v49  ;;  %v1298_v51 = vadd.f32 %v1297_v26, %v1296_v41  ;;  %v810_v4 = vsel %vm282_vm0, %v802_v36, %v803_v58 }
 0x16b   :  { %1547 = vmatmul.mubr.f32.gmra.mrb[42].mxu0 %v810_v4  ;;  %v762_v8 = vsel %vm201_vm1, %v754_v32, %v755_v55 }
 0x16c   :  { %v725_v12 = vadd.f32 %v2102_v40, %v704_v3  ;;  %v682_v59 = vadd.f32 %v2171_v50, %v1298_v51  ;;  %v804_v61 = vrot.slane %v740_v1, 1  ;;  %v756_v62 = vrot.slane %v740_v1, 7 }
 0x16e   :  { %v741_v21 = vmax.f32 %v725_v12, 0.0  ;;  %v705_v19 = vmul.f32 %v2097_v38, %v682_v59  ;;  %v809_v16 = vsel %vm282_vm0, %v803_v58, %v804_v61  ;;  %v761_v20 = vsel %vm201_vm1, %v755_v55, %v756_v62  ;;  %v1692_v55 = vld [vmem:[#allocation2 + $0x18] sm:$0xff] }
 0x16f   :  { %1549 = vmatprep.mubr.f32.mxu0 %v809_v16 }
 0x170   :  { %v726_v17 = vadd.f32 %v2102_v40, %v705_v19  ;;  %v805_v23 = vrot.slane %v741_v21, 1  ;;  %v757_v15 = vrot.slane %v741_v21, 7  ;;  %v1694_v19 = vld [vmem:[#allocation2 + $0x28] sm:$0xff] }
 0x172   :  { %v742_v29 = vmax.f32 %v726_v17, 0.0  ;;  %v808_v50 = vsel %vm282_vm0, %v804_v61, %v805_v23  ;;  %v760_v30 = vsel %vm201_vm1, %v756_v62, %v757_v15 }
 0x173   :  { %1550 = vmatmul.mubr.f32.gmra.mrb[44].mxu0 %v808_v50 }
 0x174   :  { %v758_v38 = vrot.slane %v742_v29, 7  ;;  %v806_v47 = vrot.slane %v742_v29, 1 }
 0x176   :  { %v774_v33 = vsel %vm201_vm1, %v758_v38, %v743_v9  ;;  %v807_v40 = vsel %vm282_vm0, %v805_v23, %v806_v47  ;;  %v822_v34 = vsel %vm282_vm0, %v806_v47, %v791_v2  ;;  %v759_v36 = vsel %vm201_vm1, %v757_v15, %v758_v38 }
 0x177   :  { %1217 = vmatmul.mubr.msk.f32.vlgmr.msra.gmra.mrb[16].mxu1 %vm95_vm2, %v774_v33  ;;  %1552 = vmatprep.mubr.f32.mxu0 %v807_v40  ;;  %v1696_v40 = vld [vmem:[#allocation2 + $0x38] sm:$0xff] }
 0x178   :  { %956 = vmatprep.mubr.f32.mxu1 %v2113_v63  ;;  %1553 = vmatmul.mubr.msk.f32.gmra.mrb[46].mxu0 %vm126_vm3, %v822_v34 }
 0x17b   :  { %957 = vmatmul.mubr.f32.gmra.mrb[18].mxu1 %v2134_v18 }
 0x17c   :  { %961 = vmatprep.mubr.f32.mxu1 %v2123_v11 }
 0x17f   :  { %962 = vmatmul.mubr.f32.gmra.mrb[20].mxu1 %v2150_v27 }
 0x180   :  { %966 = vmatprep.mubr.f32.mxu1 %v2141_v22 }
 0x183   :  { %967 = vmatmul.mubr.f32.gmra.mrb[22].mxu1 %v2166_v43 }
 0x184   :  { %971 = vmatprep.mubr.f32.mxu1 %v2157_v39 }
 0x187   :  { %972 = vmatmul.mubr.f32.gmra.mrb[24].mxu1 %v2182_v60 }
 0x188   :  { %976 = vmatprep.mubr.f32.mxu1 %v2173_v52 }
 0x18b   :  { %977 = vmatmul.mubr.f32.gmra.mrb[26].mxu1 %v2195_v14 }
 0x18c   :  { %981 = vmatprep.mubr.f32.mxu1 %v2188_v5 }
 0x18f   :  { %982 = vmatmul.mubr.f32.gmra.mrb[28].mxu1 %v2207_v25 }
 0x190   :  { %986 = vmatprep.mubr.f32.mxu1 %v2200_v28 }
 0x193   :  { %987 = vmatmul.mubr.f32.gmra.mrb[30].mxu1 %v2220_v44  ;;  %v1689_v44 = vld [vmem:[#allocation2] sm:$0xff] }
 0x194   :  { %991 = vmatprep.mubr.f32.mxu1 %v2213_v35 }
 0x197   :  { %992 = vmatmul.mubr.f32.gmra.mrb[32].mxu1 %v2233_v0 }
 0x198   :  { %996 = vmatprep.mubr.f32.mxu1 %v2226_v57 }
 0x19b   :  { %997 = vmatmul.mubr.f32.gmra.mrb[34].mxu1 %v2246_v6 }
 0x19c   :  { %1001 = vmatprep.mubr.f32.mxu1 %v2239_v10 }
 0x19f   :  { %1002 = vmatmul.mubr.f32.gmra.mrb[36].mxu1 %v2259_v31  ;;  %v1690_v31 = vld [vmem:[#allocation2 + $0x8] sm:$0xff] }
 0x1a0   :  { %1006 = vmatprep.mubr.f32.mxu1 %v2252_v24 }
 0x1a3   :  { %1007 = vmatmul.mubr.f32.gmra.mrb[38].mxu1 %v763_v54 }
 0x1a4   :  { %1011 = vmatprep.mubr.f32.mxu1 %v2265_v56 }
 0x1a7   :  { %1012 = vmatmul.mubr.f32.gmra.mrb[40].mxu1 %v762_v8  ;;  %v1693_v8 = vld [vmem:[#allocation2 + $0x20] sm:$0xff] }
 0x1a8   :  { %1016 = vmatprep.mubr.f32.mxu1 %v740_v1 }
 0x1ab   :  { %1017 = vmatmul.mubr.f32.gmra.mrb[42].mxu1 %v761_v20 }
 0x1ac   :  { %1021 = vmatprep.mubr.f32.mxu1 %v741_v21 }
 0x1af   :  { %1022 = vmatmul.mubr.f32.gmra.mrb[44].mxu1 %v760_v30 }
 0x1b0   :  { %1026 = vmatprep.mubr.f32.mxu1 %v742_v29  ;;  %v1695_v29 = vld [vmem:[#allocation2 + $0x30] sm:$0xff] }
 0x1b3   :  { %1027 = vmatmul.mubr.f32.gmra.mrb[46].mxu1 %v759_v36 }
 0x216   :  { %v1533_v7 = vpop.f32.mrb[32].mxu0 }
 0x217   :  { %v1098_v13 = vpop.f32.mrb[33].mxu0 }
 0x21e   :  { %v1536_v53 = vpop.f32.mrb[34].mxu0 }
 0x21f   :  { %v1108_v63 = vpop.f32.mrb[35].mxu0 }
 0x226   :  { %v1539_v2 = vpop.f32.mrb[36].mxu0 }
 0x227   :  { %v1118_v9 = vpop.f32.mrb[37].mxu0 }
 0x22e   :  { %v2331_v11 = vpop.f32.mrb[38].mxu0 }
 0x22f   :  { %v1128_v18 = vpop.f32.mrb[39].mxu0 }
 0x236   :  { %v2333_v22 = vpop.f32.mrb[40].mxu0 }
 0x237   :  { %v2335_v27 = vpop.f32.mrb[41].mxu0 }
 0x23e   :  { %v2337_v39 = vpop.f32.mrb[42].mxu0 }
 0x23f   :  { %v2339_v43 = vpop.f32.mrb[43].mxu0 }
 0x246   :  { %v2341_v52 = vpop.f32.mrb[44].mxu0 }
 0x247   :  { %v2343_v60 = vpop.f32.mrb[45].mxu0 }
 0x24a   :  { %v1363_v5 = vpop.f32.mrb[16].mxu1 }
 0x24b   :  { %v1364_v14 = vpop.f32.mrb[17].mxu1  ;;  %v2345_v28 = vpop.f32.mrb[46].mxu0 }
 0x24c   :  { %v1365_v25 = vadd.f32 %v1364_v14, %v1363_v5  ;;  %v2347_v35 = vpop.f32.mrb[47].mxu0 }
 0x24e   :  { %v954_v57 = vadd.f32 %v1689_v44, %v1365_v25  ;;  %v1366_v0 = vpop.f32.mrb[18].mxu1  ;;  %v1698_v44 = vld [vmem:[#allocation2 + $0x48] sm:$0xff] }
 0x24f   :  { %v1367_v10 = vpop.f32.mrb[19].mxu1 }
 0x250   :  { %v1099_v6 = vadd.f32 %v1098_v13, %v954_v57  ;;  %v1368_v24 = vadd.f32 %v1367_v10, %v1366_v0 }
 0x252   :  { %1177 = vst [vmem:[#allocation8] sm:$0xff] %v1099_v6  ;;  %v959_v32 = vadd.f32 %v1690_v31, %v1368_v24  ;;  %v1369_v42 = vpop.f32.mrb[20].mxu1  ;;  %v1699_v24 = vld [vmem:[#allocation2 + $0x50] sm:$0xff] }
 0x253   :  { %v1370_v56 = vpop.f32.mrb[21].mxu1 }
 0x254   :  { %v1104_v45 = vadd.f32 %v1533_v7, %v959_v32  ;;  %v1371_v46 = vadd.f32 %v1370_v56, %v1369_v42 }
 0x256   :  { %1178 = vst [vmem:[#allocation8 + $0x8] sm:$0xff] %v1104_v45  ;;  %v964_v54 = vadd.f32 %v1691_v48, %v1371_v46  ;;  %v1372_v37 = vpop.f32.mrb[22].mxu1  ;;  %v1700_v45 = vld [vmem:[#allocation2 + $0x58] sm:$0xff] }
 0x257   :  { %v1373_v49 = vpop.f32.mrb[23].mxu1 }
 0x258   :  { %v1109_v41 = vadd.f32 %v1108_v63, %v964_v54  ;;  %v1374_v58 = vadd.f32 %v1373_v49, %v1372_v37  ;;  %v1697_v63 = vld [vmem:[#allocation2 + $0x40] sm:$0xff] }
 0x259   :  { %v1701_v49 = vld [vmem:[#allocation2 + $0x60] sm:$0xff] }
 0x25a   :  { %1179 = vst [vmem:[#allocation8 + $0x10] sm:$0xff] %v1109_v41  ;;  %v969_v26 = vadd.f32 %v1692_v55, %v1374_v58  ;;  %v1375_v1 = vpop.f32.mrb[24].mxu1 }
 0x25b   :  { %v1376_v3 = vpop.f32.mrb[25].mxu1 }
 0x25c   :  { %v1114_v51 = vadd.f32 %v1536_v53, %v969_v26  ;;  %v1377_v4 = vadd.f32 %v1376_v3, %v1375_v1  ;;  %v1702_v1 = vld [vmem:[#allocation2 + $0x68] sm:$0xff] }
 0x25e   :  { %1180 = vst [vmem:[#allocation8 + $0x18] sm:$0xff] %v1114_v51  ;;  %v974_v12 = vadd.f32 %v1693_v8, %v1377_v4  ;;  %v1378_v59 = vpop.f32.mrb[26].mxu1 }
 0x25f   :  { %v1379_v61 = vpop.f32.mrb[27].mxu1 }
 0x260   :  { %v1119_v62 = vadd.f32 %v1118_v9, %v974_v12  ;;  %v1380_v21 = vadd.f32 %v1379_v61, %v1378_v59  ;;  %v1703_v12 = vld [vmem:[#allocation2 + $0x70] sm:$0xff] }
 0x262   :  { %1181 = vst [vmem:[#allocation8 + $0x20] sm:$0xff] %v1119_v62  ;;  %v979_v16 = vadd.f32 %v1694_v19, %v1380_v21  ;;  %v1381_v20 = vpop.f32.mrb[28].mxu1 }
 0x263   :  { %v1382_v17 = vpop.f32.mrb[29].mxu1 }
 0x264   :  { %v1124_v23 = vadd.f32 %v1539_v2, %v979_v16  ;;  %v1383_v15 = vadd.f32 %v1382_v17, %v1381_v20 }
 0x266   :  { %1182 = vst [vmem:[#allocation8 + $0x28] sm:$0xff] %v1124_v23  ;;  %v984_v50 = vadd.f32 %v1695_v29, %v1383_v15  ;;  %v1384_v30 = vpop.f32.mrb[30].mxu1 }
 0x267   :  { %v1385_v38 = vpop.f32.mrb[31].mxu1 }
 0x268   :  { %v1129_v47 = vadd.f32 %v1128_v18, %v984_v50  ;;  %v1386_v33 = vadd.f32 %v1385_v38, %v1384_v30 }
 0x26a   :  { %1183 = vst [vmem:[#allocation8 + $0x30] sm:$0xff] %v1129_v47  ;;  %v989_v34 = vadd.f32 %v1696_v40, %v1386_v33  ;;  %v1387_v36 = vpop.f32.mrb[32].mxu1 }
 0x26b   :  { %v1388_v7 = vpop.f32.mrb[33].mxu1 }
 0x26c   :  { %v1134_v13 = vadd.f32 %v2331_v11, %v989_v34  ;;  %v1389_v53 = vadd.f32 %v1388_v7, %v1387_v36 }
 0x26e   :  { %1184 = vst [vmem:[#allocation8 + $0x38] sm:$0xff] %v1134_v13  ;;  %v994_v9 = vadd.f32 %v1697_v63, %v1389_v53  ;;  %v1390_v2 = vpop.f32.mrb[34].mxu1 }
 0x26f   :  { %v1391_v5 = vpop.f32.mrb[35].mxu1 }
 0x270   :  { %v1139_v14 = vadd.f32 %v2335_v27, %v994_v9  ;;  %v1392_v25 = vadd.f32 %v1391_v5, %v1390_v2 }
 0x272   :  { %1185 = vst [vmem:[#allocation8 + $0x40] sm:$0xff] %v1139_v14  ;;  %v999_v18 = vadd.f32 %v1698_v44, %v1392_v25  ;;  %v1393_v57 = vpop.f32.mrb[36].mxu1 }
 0x273   :  { %v1394_v0 = vpop.f32.mrb[37].mxu1 }
 0x274   :  { %v1144_v10 = vadd.f32 %v2333_v22, %v999_v18  ;;  %v1395_v6 = vadd.f32 %v1394_v0, %v1393_v57 }
 0x276   :  { %1186 = vst [vmem:[#allocation8 + $0x48] sm:$0xff] %v1144_v10  ;;  %v1004_v11 = vadd.f32 %v1699_v24, %v1395_v6  ;;  %v1396_v31 = vpop.f32.mrb[38].mxu1 }
 0x277   :  { %v1397_v32 = vpop.f32.mrb[39].mxu1 }
 0x278   :  { %v1149_v42 = vadd.f32 %v2339_v43, %v1004_v11  ;;  %v1398_v56 = vadd.f32 %v1397_v32, %v1396_v31 }
 0x27a   :  { %1187 = vst [vmem:[#allocation8 + $0x50] sm:$0xff] %v1149_v42  ;;  %v1009_v27 = vadd.f32 %v1700_v45, %v1398_v56  ;;  %v1399_v46 = vpop.f32.mrb[40].mxu1 }
 0x27b   :  { %v1400_v48 = vpop.f32.mrb[41].mxu1 }
 0x27c   :  { %v1154_v54 = vadd.f32 %v2337_v39, %v1009_v27  ;;  %v1401_v37 = vadd.f32 %v1400_v48, %v1399_v46 }
 0x27e   :  { %1188 = vst [vmem:[#allocation8 + $0x58] sm:$0xff] %v1154_v54  ;;  %v1014_v22 = vadd.f32 %v1701_v49, %v1401_v37  ;;  %v1402_v41 = vpop.f32.mrb[42].mxu1 }
 0x27f   :  { %v1403_v58 = vpop.f32.mrb[43].mxu1 }
 0x280   :  { %v1159_v55 = vadd.f32 %v2343_v60, %v1014_v22  ;;  %v1404_v26 = vadd.f32 %v1403_v58, %v1402_v41  ;;  %v1704_v60 = vld [vmem:[#allocation2 + $0x78] sm:$0xff] }
 0x282   :  { %1189 = vst [vmem:[#allocation8 + $0x60] sm:$0xff] %v1159_v55  ;;  %v1019_v43 = vadd.f32 %v1702_v1, %v1404_v26  ;;  %v1405_v3 = vpop.f32.mrb[44].mxu1 }
 0x283   :  { %v1406_v51 = vpop.f32.mrb[45].mxu1 }
 0x284   :  { %v1164_v4 = vadd.f32 %v2341_v52, %v1019_v43  ;;  %v1407_v8 = vadd.f32 %v1406_v51, %v1405_v3 }
 0x286   :  { %1190 = vst [vmem:[#allocation8 + $0x68] sm:$0xff] %v1164_v4  ;;  %v1024_v39 = vadd.f32 %v1703_v12, %v1407_v8  ;;  %v1408_v59 = vpop.f32.mrb[46].mxu1 }
 0x287   :  { %v1409_v61 = vpop.f32.mrb[47].mxu1 }
 0x288   :  { %v1169_v62 = vadd.f32 %v2347_v35, %v1024_v39  ;;  %v1410_v21 = vadd.f32 %v1409_v61, %v1408_v59 }
 0x28a   :  { %1191 = vst [vmem:[#allocation8 + $0x70] sm:$0xff] %v1169_v62  ;;  %v1029_v19 = vadd.f32 %v1704_v60, %v1410_v21 }
 0x28c   :  { %v1174_v16 = vadd.f32 %v2345_v28, %v1029_v19 }
 0x28e   :  { %1192 = vst [vmem:[#allocation8 + $0x78] sm:$0xff] %v1174_v16 }
 0x28f   :  { %1782 = shalt.err (!%p1779_p0)
}
 0x290   :  { %s1783_s16 = scalar_lea.hbm %s2378_s5, 2048 }
 0x291   :  { %p1784_p1 = scmp.ne.s32.totalorder %s2378_s5, %s1783_s16  ;;  %p1787_p2 = scmp.lt.u32.totalorder %s1783_s16, %s2378_s5 }
 0x293   :  { %p1789_p3 = pnand %p1787_p2, %p1784_p1 }
 0x295   :  { %1792 = shalt.err (!%p1789_p3)
}
 0x296   :  { %1204 = dma.vmem_to_hbm [thread:$0]  %s1199_s12, 2048, %s2378_s5, [#allocation4], %s1801_s30, %s1801_s30, %s1802_s6  }
 0x297   :  { %1797 = dma.done.wait [#allocation4], 2048  }
 0x298   :  { %1798 = vsyncadd [#allocation4], 4294965248 }
 0x299   :  { %1208 = vsyncpa [#allocation3], 1 }
 0x29a   :  { %1209 = vsyncpa [#allocation6], 1 }
 0x29b   :  { %1210 = vsyncpa [#allocation4], 1 }

</bundles_post_ra>
